<compile_context>
chip_gen: v6e
topology: v6e:2x2x1
jax: 0.10.0
libtpu: 0.0.40
codegen_flags: <defaults>
</compile_context>

<pallas_src>
import functools

import jax
import jax.numpy as jnp
from jax import lax
from jax.experimental import pallas as pl
from jax.experimental.pallas import tpu as pltpu


def _memory_block_kernel(x_ref, mem_ref, out_ref, *, inv_temperature, shrink_thres):
    x = x_ref[...]                                   # (tile_n, z_pad), native dtype
    mem = mem_ref[...]                               # (mem_dim, z_pad), native dtype

    # Fold temperature into x (cheaper: scales z_dim lanes, not mem_dim logits).
    x = x * jnp.asarray(inv_temperature, dtype=x.dtype)

    # att = (x / T) @ mem.T, contracted over the shared last dim — no transpose.
    att = lax.dot_general(
        x, mem,
        dimension_numbers=(((1,), (1,)), ((), ())),
        preferred_element_type=jnp.float32,
    )                                                # (tile_n, mem_dim) f32

    # Numerically-stable softmax over dim=1 (memory slots).
    att = att - jnp.max(att, axis=1, keepdims=True)
    e = jnp.exp(att)
    att = e * pl.reciprocal(jnp.sum(e, axis=1, keepdims=True), approx=True)

    if shrink_thres > 0:
        eps = 1e-12
        shifted = att - shrink_thres
        # hard_shrink_relu: relu(x - lambd) * x / (|x - lambd| + eps)
        att = jnp.maximum(shifted, 0.0) * att / (jnp.abs(shifted) + eps)
        # F.normalize(p=1, dim=1): x / max(||x||_1, eps). att >= 0 here, so no abs.
        l1 = jnp.sum(att, axis=1, keepdims=True)
        att = att * pl.reciprocal(jnp.maximum(l1, eps), approx=True)

    # Reconstruct from memory: (tile_n, z_pad). Feed the MXU in mem's dtype
    # (keeps bf16 inputs on the fast bf16 path; no-op for f32).
    out = jnp.dot(att.astype(mem_ref.dtype), mem, preferred_element_type=jnp.float32)
    out_ref[...] = out.astype(out_ref.dtype)


def _auto_tile_n(N, mem_dim, z_pad, x_itemsize, mem_itemsize):
    """Largest row tile that keeps the per-step VMEM working set ~<= 12 MiB."""
    budget = 12 * 1024 * 1024
    fixed = 2 * mem_dim * z_pad * mem_itemsize          # mem block (double-buffered)
    per_row = (
        2 * z_pad * x_itemsize                          # x tile (double-buffered)
        + 2 * z_pad * x_itemsize                        # out tile (double-buffered)
        + 2 * z_pad * 4                                 # f32 x/out intermediates
        + 2 * mem_dim * 4                               # f32 att / exp intermediates
    )
    tile = (budget - fixed) // per_row if budget > fixed else 16
    tile = max(16, min(512, int(tile)))
    tile = (tile // 16) * 16                            # sublane multiple (bf16-safe)
    # Don't tile past the (16-rounded) batch — avoids padding tiny batches to 512.
    n_round = 16 * pl.cdiv(N, 16)
    return max(16, min(tile, n_round))


def memory_block_forward(x, mem, *, temperature=0.5, shrink_thres=0.005, tile_n=None):
    """x: (N, z_dim), mem: (mem_dim, z_dim) -> (N, z_dim)."""
    N, z_dim = x.shape
    mem_dim, z_dim_m = mem.shape
    assert z_dim == z_dim_m

    # Lane-dense padding of the feature dim (zero pad is exact for both matmuls).
    z_pad = 128 * pl.cdiv(z_dim, 128)

    if tile_n is None:
        tile_n = _auto_tile_n(N, mem_dim, z_pad, x.dtype.itemsize, mem.dtype.itemsize)

    n_tiles = pl.cdiv(N, tile_n)
    n_pad = tile_n * n_tiles

    x_p = x
    if n_pad != N or z_pad != z_dim:
        x_p = jnp.pad(x, ((0, n_pad - N), (0, z_pad - z_dim)))
    mem_p = mem
    if z_pad != z_dim:
        mem_p = jnp.pad(mem, ((0, 0), (0, z_pad - z_dim)))

    kernel = functools.partial(
        _memory_block_kernel,
        inv_temperature=1.0 / float(temperature),
        shrink_thres=float(shrink_thres),
    )

    out_p = pl.pallas_call(
        kernel,
        out_shape=jax.ShapeDtypeStruct((n_pad, z_pad), x.dtype),
        grid_spec=pltpu.PrefetchScalarGridSpec(
            num_scalar_prefetch=0,
            grid=(n_tiles,),
            in_specs=[
                pl.BlockSpec((tile_n, z_pad), lambda i: (i, 0)),    # x row tile
                pl.BlockSpec((mem_dim, z_pad), lambda i: (0, 0)),   # full memory, resident
            ],
            out_specs=pl.BlockSpec((tile_n, z_pad), lambda i: (i, 0)),
        ),
        compiler_params=pltpu.CompilerParams(
            dimension_semantics=("parallel",),
            vmem_limit_bytes=32 * 1024 * 1024,
        ),
    )(x_p, mem_p)

    return out_p[:N, :z_dim]


def _reference(x, mem, temperature=0.5, shrink_thres=0.005):
    att = x @ mem.T
    att = jax.nn.softmax(att / temperature, axis=1)
    if shrink_thres > 0:
        eps = 1e-12
        shifted = att - shrink_thres
        att = jnp.maximum(shifted, 0.0) * att / (jnp.abs(shifted) + eps)
        l1 = jnp.sum(jnp.abs(att), axis=1, keepdims=True)
        att = att / jnp.maximum(l1, eps)
    return att @ mem


if __name__ == "__main__":
    # Small shapes consistent with the module: batch=8, z_dim=32, mem_dim=64.
    batch, z_dim, mem_dim = 8, 32, 64
    temperature, shrink_thres = 0.5, 0.005

    key = jax.random.PRNGKey(0)
    kx, kmem = jax.random.split(key)

    # Deterministic parameter init matching reset_parameters():
    # uniform(-stdv, stdv) with stdv = 1/sqrt(z_dim).
    stdv = 1.0 / (z_dim ** 0.5)
    mem = jax.random.uniform(kmem, (mem_dim, z_dim), jnp.float32, -stdv, stdv)

    x = jax.random.normal(kx, (batch, z_dim), jnp.float32)

    out = memory_block_forward(
        x, mem, temperature=temperature, shrink_thres=shrink_thres
    )
    out = jax.block_until_ready(out)

    ref = _reference(x, mem, temperature, shrink_thres)
    assert out.shape == (batch, z_dim)
    # approx=True reciprocals introduce ~1e-4-level error; tolerance set accordingly.
    assert jnp.allclose(out, ref, atol=1e-3, rtol=1e-3)

    print("KERNEL_OK")
</pallas_src>

<mosaic_0001>
module attributes {stable_mosaic.version = 11 : i64} {
  func.func @_memory_block_kernel(%arg0: i32, %arg1: memref<16x128xf32, #tpu.memory_space<vmem>>, %arg2: memref<64x128xf32, #tpu.memory_space<vmem>>, %arg3: memref<16x128xf32, #tpu.memory_space<vmem>>) attributes {dimension_semantics = [#tpu.dimension_semantics<parallel>], iteration_bounds = array<i64: 1>, scalar_prefetch = 0 : i64, scratch_operands = 0 : i64, tpu.core_type = #tpu.core_type<tc>, window_params = [{transform_indices = @transform_0, window_bounds = array<i64: 16, 128>}, {pipeline_mode = #tpu.pipeline_mode<synchronous>, transform_indices = @transform_1, window_bounds = array<i64: 64, 128>}, {transform_indices = @transform_2, window_bounds = array<i64: 16, 128>}]} {
    %c0 = arith.constant 0 : index
    %c0_0 = arith.constant 0 : index
    %0 = vector.load %arg1[%c0, %c0_0] : memref<16x128xf32, #tpu.memory_space<vmem>>, vector<16x128xf32>
    %c0_1 = arith.constant 0 : index
    %c0_2 = arith.constant 0 : index
    %1 = vector.load %arg2[%c0_1, %c0_2] : memref<64x128xf32, #tpu.memory_space<vmem>>, vector<64x128xf32>
    %cst = arith.constant 2.000000e+00 : f32
    %2 = vector.broadcast %cst : f32 to vector<16x128xf32>
    %3 = arith.mulf %0, %2 : vector<16x128xf32>
    %cst_3 = arith.constant dense<0.000000e+00> : vector<16x64xf32>
    %4 = tpu.matmul %3, %1, %cst_3 {dimension_numbers = #tpu.dot_dimension_numbers<[1], [1], [0], [0], [0, 0, 1, 0], [], []>} : vector<16x128xf32>, vector<64x128xf32>, vector<16x64xf32> -> vector<16x64xf32>
    %cst_4 = arith.constant dense<0xFF800000> : vector<16xf32>
    %5 = vector.multi_reduction <maximumf>, %4, %cst_4 [1] : vector<16x64xf32> to vector<16xf32>
    %6 = vector.shape_cast %5 : vector<16xf32> to vector<16x1xf32>
    %7 = vector.broadcast %6 : vector<16x1xf32> to vector<16x64xf32>
    %8 = arith.subf %4, %7 : vector<16x64xf32>
    %9 = math.exp %8 : vector<16x64xf32>
    %cst_5 = arith.constant dense<0.000000e+00> : vector<16xf32>
    %10 = vector.multi_reduction <add>, %9, %cst_5 [1] : vector<16x64xf32> to vector<16xf32>
    %11 = vector.shape_cast %10 : vector<16xf32> to vector<16x1xf32>
    %12 = tpu.reciprocal %11 {approx = true} : vector<16x1xf32> -> vector<16x1xf32>
    %13 = vector.broadcast %12 : vector<16x1xf32> to vector<16x64xf32>
    %14 = arith.mulf %9, %13 : vector<16x64xf32>
    %cst_6 = arith.constant 5.000000e-03 : f32
    %15 = vector.broadcast %cst_6 : f32 to vector<16x64xf32>
    %16 = arith.subf %14, %15 : vector<16x64xf32>
    %cst_7 = arith.constant 0.000000e+00 : f32
    %17 = vector.broadcast %cst_7 : f32 to vector<16x64xf32>
    %18 = arith.maximumf %16, %17 : vector<16x64xf32>
    %19 = arith.mulf %18, %14 : vector<16x64xf32>
    %20 = math.absf %16 : vector<16x64xf32>
    %cst_8 = arith.constant 9.99999996E-13 : f32
    %21 = vector.broadcast %cst_8 : f32 to vector<16x64xf32>
    %22 = arith.addf %20, %21 : vector<16x64xf32>
    %23 = arith.divf %19, %22 : vector<16x64xf32>
    %cst_9 = arith.constant dense<0.000000e+00> : vector<16xf32>
    %24 = vector.multi_reduction <add>, %23, %cst_9 [1] : vector<16x64xf32> to vector<16xf32>
    %25 = vector.shape_cast %24 : vector<16xf32> to vector<16x1xf32>
    %cst_10 = arith.constant 9.99999996E-13 : f32
    %26 = vector.broadcast %cst_10 : f32 to vector<16x1xf32>
    %27 = arith.maximumf %25, %26 : vector<16x1xf32>
    %28 = tpu.reciprocal %27 {approx = true} : vector<16x1xf32> -> vector<16x1xf32>
    %29 = vector.broadcast %28 : vector<16x1xf32> to vector<16x64xf32>
    %30 = arith.mulf %23, %29 : vector<16x64xf32>
    %cst_11 = arith.constant dense<0.000000e+00> : vector<16x128xf32>
    %31 = tpu.matmul %30, %1, %cst_11 {dimension_numbers = #tpu.dot_dimension_numbers<[1], [0], [0], [1], [0, 0, 1, 1], [], []>} : vector<16x64xf32>, vector<64x128xf32>, vector<16x128xf32> -> vector<16x128xf32>
    %c0_12 = arith.constant 0 : index
    %c0_13 = arith.constant 0 : index
    %32 = vector.load %arg3[%c0_12, %c0_13] : memref<16x128xf32, #tpu.memory_space<vmem>>, vector<16x128xf32>
    tpu.vector_store %arg3[%c0_12, %c0_13], %31 {strides = array<i32>} : memref<16x128xf32, #tpu.memory_space<vmem>>, vector<16x128xf32>,
    return
  }
  func.func @transform_0(%arg0: i32) -> (i32, i32) {
    %c0_i32 = arith.constant 0 : i32
    %c0_i32_0 = arith.constant 0 : i32
    return %arg0, %c0_i32 : i32, i32
  }
  func.func @transform_1(%arg0: i32) -> (i32, i32) {
    %c0_i32 = arith.constant 0 : i32
    %c0_i32_0 = arith.constant 0 : i32
    %c0_i32_1 = arith.constant 0 : i32
    return %c0_i32, %c0_i32_0 : i32, i32
  }
  func.func @transform_2(%arg0: i32) -> (i32, i32) {
    %c0_i32 = arith.constant 0 : i32
    %c0_i32_0 = arith.constant 0 : i32
    return %arg0, %c0_i32 : i32, i32
  }
}

</mosaic_0001>

<bundles_post_ra>
// kernel: tpu_custom_call.1
= control target key start
LH: loop header
LB: loop body
LE: loop exit
PB: predicated region body
PF: predicated region fallthrough
CT: control target
= control target key end

     0   :  { %7 = vsyncpa [#allocation3], 0  ;;  %s472_s0 = inlined_call_operand.hbm [shape: f32[16,128], index: 0, kind: input, shape index: {}]   ;;  %s473_s1 = inlined_call_operand.hbm [shape: f32[64,128], index: 1, kind: input, shape index: {}]   ;;  %s474_s2 = inlined_call_operand.hbm [shape: f32[16,128], index: 2, kind: output, shape index: {}]  }
   0x1   :  { %8 = vsyncpa [#allocation6], 0 }
   0x2   :  { %9 = vsyncpa [#allocation4], 0  ;;  %s426_s9 = smov [#allocation2]  }
   0x3   :  { %s15_s10 = sshll.u32 %s426_s9, 4  ;;  %s16_s10 = int_to_ptr.vmem [resolvable:$true] %s15_s10 }
   0x4   :  { %s368_s11 = scalar_lea.vmem %s16_s10, 256  ;;  %p373_p1 = scmp.lt.s32.totalorder %s16_s10, %s16_s10 }
   0x5   :  { %p369_p0 = scmp.ne.s32.totalorder %s16_s10, %s368_s11  ;;  %p374_p2 = scmp.lt.s32.totalorder %s368_s11, %s368_s11 }
   0x7   :  { %p375_p3 = por %p374_p2, %p373_p1 }
   0x9   :  { %p376_p4 = pnand %p375_p3, %p369_p0 }
   0xb   :  { %379 = shalt.err (!%p376_p4)
}
   0xc   :  { %s427_s12 = smov 128   ;;  %s428_s13 = smov 8  }
   0xd   :  { %21 = dma.hbm_to_vmem [thread:$0]  %s472_s0, 256, %s16_s10, [#allocation3], %s427_s12, %s427_s12, %s428_s13  }
   0xe   :  { %s429_s16 = smov [#allocation5]  }
   0xf   :  { %s27_s17 = sshll.u32 %s429_s16, 4  ;;  %s28_s17 = int_to_ptr.vmem [resolvable:$true] %s27_s17 }
  0x10   :  { %s388_s18 = scalar_lea.vmem %s28_s17, 1024  ;;  %p393_p6 = scmp.lt.s32.totalorder %s28_s17, %s28_s17 }
  0x11   :  { %p389_p5 = scmp.ne.s32.totalorder %s28_s17, %s388_s18  ;;  %p394_p7 = scmp.lt.s32.totalorder %s388_s18, %s388_s18 }
  0x13   :  { %p395_p8 = por %p394_p7, %p393_p6 }
  0x15   :  { %p396_p9 = pnand %p395_p8, %p389_p5 }
  0x17   :  { %399 = shalt.err (!%p396_p9)
}
  0x18   :  { %33 = dma.hbm_to_vmem [thread:$0]  %s473_s1, 1024, %s28_s17, [#allocation6], %s427_s12, %s427_s12, %s428_s13  }
  0x19   :  { %420 = dma.done.wait [#allocation3], 256  }
  0x1a   :  { %421 = vsyncadd [#allocation3], 4294967040 }
  0x1b   :  { %422 = dma.done.wait [#allocation6], 1024  }
  0x1c   :  { %423 = vsyncadd [#allocation6], 4294966272  ;;  %v49_v0 = vld [vmem:[#allocation5 + $0x38] sm:$0xff]  ;;  %v48_v1 = vld [vmem:[#allocation5 + $0x30] sm:$0xff]  ;;  %vm127_vm0 = vcmask 523264   ;;  %s430_s0 = smov [#allocation7]  }
  0x1d   :  { %301 = vmatprep.subr.mxu0 %v49_v0  ;;  %320 = vmatprep.subr.mxu1 %v49_v0  ;;  %v40_v2 = vld [vmem:[#allocation2] sm:$0xff]  ;;  %v47_v4 = vld [vmem:[#allocation5 + $0x28] sm:$0xff]  ;;  %v46_v5 = vld [vmem:[#allocation5 + $0x20] sm:$0xff]  ;;  %s264_s1 = sshll.u32 %s430_s0, 4  ;;  %s265_s1 = int_to_ptr.vmem [resolvable:$true] %s264_s1 }
  0x1e   :  { %302 = vmatpush3.xpose.msra.mxu0 %v49_v0  ;;  %321 = vmatpush3.msra.mxu1 %v49_v0  ;;  %v50_v3 = vmul.f32 2.0, %v40_v2  ;;  %v45_v6 = vld [vmem:[#allocation5 + $0x18] sm:$0xff]  ;;  %v44_v7 = vld [vmem:[#allocation5 + $0x10] sm:$0xff]  ;;  %v43_v8 = vld [vmem:[#allocation5 + $0x8] sm:$0xff]  ;;  %s400_s21 = scalar_lea.vmem %s265_s1, 256  ;;  %p405_p11 = scmp.lt.s32.totalorder %s265_s1, %s265_s1 }
  0x1f   :  { %303 = vmatprep.subr.mxu0 %v48_v1  ;;  %322 = vmatprep.subr.mxu1 %v48_v1  ;;  %v42_v9 = vld [vmem:[#allocation5] sm:$0xff]  ;;  %v41_v10 = vld [vmem:[#allocation2 + $0x8] sm:$0xff]  ;;  %p401_p10 = scmp.ne.s32.totalorder %s265_s1, %s400_s21  ;;  %p406_p12 = scmp.lt.s32.totalorder %s400_s21, %s400_s21 }
  0x20   :  { %323 = vmatpush3.msra.mxu1 %v48_v1  ;;  %317 = vmatprep.mubr.f32.mxu0 %v50_v3  ;;  %v51_v11 = vmul.f32 2.0, %v41_v10 }
  0x21   :  { %324 = vmatprep.subr.mxu1 %v47_v4  ;;  %p407_p13 = por %p406_p12, %p405_p11 }
  0x22   :  { %304 = vmatpush3.xpose.msra.mxu0 %v48_v1  ;;  %325 = vmatpush3.msra.mxu1 %v47_v4 }
  0x23   :  { %305 = vmatprep.subr.mxu0 %v47_v4  ;;  %326 = vmatprep.subr.mxu1 %v46_v5  ;;  %p408_p0 = pnand %p407_p13, %p401_p10 }
  0x24   :  { %327 = vmatpush3.msra.mxu1 %v46_v5 }
  0x25   :  { %328 = vmatprep.subr.mxu1 %v45_v6 }
  0x26   :  { %306 = vmatpush3.xpose.msra.mxu0 %v47_v4  ;;  %329 = vmatpush3.msra.mxu1 %v45_v6 }
  0x27   :  { %307 = vmatprep.subr.mxu0 %v46_v5  ;;  %330 = vmatprep.subr.mxu1 %v44_v7 }
  0x28   :  { %331 = vmatpush3.msra.mxu1 %v44_v7 }
  0x29   :  { %332 = vmatprep.subr.mxu1 %v43_v8 }
  0x2a   :  { %308 = vmatpush3.xpose.msra.mxu0 %v46_v5  ;;  %333 = vmatpush3.msra.mxu1 %v43_v8 }
  0x2b   :  { %309 = vmatprep.subr.mxu0 %v45_v6  ;;  %334 = vmatprep.subr.mxu1 %v42_v9 }
  0x2c   :  { %335 = vmatpush3.msra.mxu1 %v42_v9 }
  0x2e   :  { %310 = vmatpush3.xpose.msra.mxu0 %v45_v6 }
  0x2f   :  { %311 = vmatprep.subr.mxu0 %v44_v7 }
  0x32   :  { %312 = vmatpush3.xpose.msra.mxu0 %v44_v7 }
  0x33   :  { %313 = vmatprep.subr.mxu0 %v43_v8 }
  0x36   :  { %314 = vmatpush3.xpose.msra.mxu0 %v43_v8 }
  0x37   :  { %315 = vmatprep.subr.mxu0 %v42_v9 }
  0x3a   :  { %316 = vmatpush3.xpose.msra.mxu0 %v42_v9 }
  0x3d   :  { %318 = vmatmul.mubr.f32.vlgmr.msra.gmra.mxu0 %v51_v11 }
  0xfd   :  { %v319_v12 = vpop.f32.mrf.mxu0 }
  0xfe   :  { %v131_v15 = vsel %vm127_vm0, %v319_v12, -inf }
  0xff   :  { %v118_v13 = vpop.f32.mrf.mxu0 }
 0x100   :  { %v128_v14 = vsel %vm127_vm0, %v118_v13, -inf }
 0x101   :  { %129 = vmax.xlane.f32.xlu0 %v128_v14 }
 0x105   :  { %132 = vmax.xlane.f32.xlu0 %v131_v15 }
 0x18a   :  { %v130_v16 = vpop.xlane.xlu0 %129 }
 0x18b   :  { %v134_v17 = vsub.f32 %v118_v13, %v130_v16 }
 0x18d   :  { %v136_v18 = vmul.f32 1.442695, %v134_v17 }
 0x18e   :  { %v133_v19 = vpop.xlane.xlu0 %132 }
 0x18f   :  { %344 = vpow2.f32 %v136_v18  ;;  %v135_v20 = vsub.f32 %v319_v12, %v133_v19 }
 0x191   :  { %v138_v21 = vmul.f32 1.442695, %v135_v20 }
 0x193   :  { %346 = vpow2.f32 %v138_v21 }
 0x19c   :  { %v345_v22 = vpop.eup %344 }
 0x19d   :  { %v140_v23 = vsel %vm127_vm0, %v345_v22, 0.0 }
 0x19e   :  { %141 = vadd.xlane.f32.xlu1 %v140_v23 }
 0x1a0   :  { %v347_v24 = vpop.eup %346 }
 0x1a1   :  { %v143_v25 = vsel %vm127_vm0, %v347_v24, 0.0 }
 0x1a2   :  { %144 = vadd.xlane.f32.xlu1 %v143_v25 }
 0x227   :  { %v142_v26 = vpop.xlane.xlu1 %141 }
 0x228   :  { %348 = vrcp.f32 %v142_v26 }
 0x22b   :  { %v145_v27 = vpop.xlane.xlu1 %144 }
 0x22c   :  { %350 = vrcp.f32 %v145_v27 }
 0x235   :  { %v349_v28 = vpop.eup %348 }
 0x236   :  { %v148_v29 = vmul.f32 %v349_v28, %v345_v22 }
 0x238   :  { %v277_v30 = vadd.f32 -0.005, %v148_v29 }
 0x239   :  { %v351_v31 = vpop.eup %350 }
 0x23a   :  { %v156_v32 = vand.u32 2147483647, %v277_v30  ;;  %v149_v33 = vmul.f32 %v351_v31, %v347_v24  ;;  %v152_v38 = vmax.f32 %v277_v30, 0.0 }
 0x23c   :  { %v158_v34 = vadd.f32 1e-12, %v156_v32  ;;  %v278_v35 = vadd.f32 -0.005, %v149_v33  ;;  %v154_v39 = vmul.f32 %v152_v38, %v148_v29 }
 0x23e   :  { %352 = vrcp.f32 %v158_v34  ;;  %v157_v36 = vand.u32 2147483647, %v278_v35  ;;  %v153_v40 = vmax.f32 %v278_v35, 0.0 }
 0x240   :  { %v159_v37 = vadd.f32 1e-12, %v157_v36  ;;  %v155_v44 = vmul.f32 %v153_v40, %v149_v33 }
 0x242   :  { %354 = vrcp.f32 %v159_v37 }
 0x24b   :  { %v353_v41 = vpop.eup %352 }
 0x24c   :  { %v161_v42 = vmul.f32 %v353_v41, %v154_v39 }
 0x24e   :  { %v164_v43 = vsel %vm127_vm0, %v161_v42, 0.0 }
 0x24f   :  { %v355_v45 = vpop.eup %354  ;;  %165 = vadd.xlane.f32.xlu0 %v164_v43 }
 0x250   :  { %v163_v46 = vmul.f32 %v355_v45, %v155_v44 }
 0x252   :  { %v167_v47 = vsel %vm127_vm0, %v163_v46, 0.0 }
 0x253   :  { %168 = vadd.xlane.f32.xlu1 %v167_v47 }
 0x2d8   :  { %v166_v48 = vpop.xlane.xlu0 %165 }
 0x2d9   :  { %v170_v49 = vmax.f32 %v166_v48, 1e-12 }
 0x2db   :  { %356 = vrcp.f32 %v170_v49 }
 0x2dc   :  { %v169_v50 = vpop.xlane.xlu1 %168 }
 0x2dd   :  { %v171_v51 = vmax.f32 %v169_v50, 1e-12 }
 0x2df   :  { %358 = vrcp.f32 %v171_v51 }
 0x2e8   :  { %v357_v52 = vpop.eup %356 }
 0x2e9   :  { %v174_v53 = vmul.f32 %v357_v52, %v161_v42 }
 0x2eb   :  { %336 = vmatprep.mubr.msk.f32.mxu1 %vm127_vm0, %v174_v53 }
 0x2ec   :  { %v359_v54 = vpop.eup %358 }
 0x2ed   :  { %v175_v55 = vmul.f32 %v359_v54, %v163_v46 }
 0x2ef   :  { %337 = vmatmul.mubr.msk.f32.vlgmr.msra.gmra.mxu1 %vm127_vm0, %v175_v55 }
 0x3af   :  { %v338_v56 = vpop.f32.mrf.mxu1 }
 0x3b0   :  { %258 = vst [vmem:[#allocation7 + $0x8] sm:$0xff] %v338_v56 }
 0x3b1   :  { %v248_v57 = vpop.f32.mrf.mxu1 }
 0x3b2   :  { %257 = vst [vmem:[#allocation7] sm:$0xff] %v248_v57 }
 0x3b3   :  { %411 = shalt.err (!%p408_p0)
}
 0x3b4   :  { %270 = dma.vmem_to_hbm [thread:$0]  %s265_s1, 256, %s474_s2, [#allocation4], %s427_s12, %s427_s12, %s428_s13  }
 0x3b5   :  { %424 = dma.done.wait [#allocation4], 256  }
 0x3b6   :  { %425 = vsyncadd [#allocation4], 4294967040 }
 0x3b7   :  { %274 = vsyncpa [#allocation3], 1 }
 0x3b8   :  { %275 = vsyncpa [#allocation6], 1 }
 0x3b9   :  { %276 = vsyncpa [#allocation4], 1 }

</bundles_post_ra>
